<compile_context>
chip_gen: v5e
topology: v5e:2x2
jax: 0.10.0
libtpu: 0.0.40
codegen_flags: <defaults>
</compile_context>

<pallas_src>
import functools

import jax
import jax.numpy as jnp
from jax import lax
from jax.experimental import pallas as pl
from jax.experimental.pallas import tpu as pltpu


def _fused_conv_relu_pool_kernel(xp_ref, w_ref, b_ref, sel_ref, o_ref, *, wc):
    xp = xp_ref[...]            # (c_in, Hc*Wc)  zero-padded input, flat spatial
    wmat = w_ref[...]           # (c_out, c_in)
    bias = b_ref[...]           # (c_out, 1)
    c_in = xp.shape[0]

    # 1x1 conv (+bias) -> (-0.5) -> ReLU on the VPU (c_in is tiny).
    # Border columns of xp are zero, so the border ring of v is relu(bias-0.5).
    v = bias - 0.5                                    # (c_out, 1), broadcasts
    for i in range(c_in):
        v = v + wmat[:, i:i + 1] * xp[i:i + 1, :]     # (c_out, Hc*Wc)
    v = jnp.maximum(v, 0.0)

    # Separable 3x3 max over the flat layout.  Roll wrap-around always hits
    # the border ring (== relu(bias - 0.5)), matching pool-padding semantics.
    vm = jnp.maximum(jnp.maximum(jnp.roll(v, wc, axis=1), v),
                     jnp.roll(v, -wc, axis=1))        # vertical 3-max
    hm = jnp.maximum(jnp.maximum(jnp.roll(vm, 1, axis=1), vm),
                     jnp.roll(vm, -1, axis=1))        # horizontal 3-max

    # Stride-2 decimation of both axes as one 0/1 selection matmul:
    # (c_out, Hc*Wc) @ (Hc*Wc, Ho*Wo), stored once (lane-dense slab).
    o_ref[...] = jnp.dot(hm, sel_ref[...], preferred_element_type=jnp.float32)


@jax.jit
def model_forward(x_nchw, weight_oihw, bias):
    """Matches torch Model.forward; x_nchw: (N, Cin, H, W) f32 -> (N, Cout, Ho, Wo)."""
    n, c_in, height, width = x_nchw.shape
    c_out = weight_oihw.shape[0]
    hc, wc = height + 2, width + 2               # conv output (1x1 kernel, padding=1)
    h_out = (hc + 2 - 3) // 2 + 1                # maxpool k=3, s=2, p=1
    w_out = (wc + 2 - 3) // 2 + 1
    l_in, l_out = hc * wc, h_out * w_out

    # Conv zero-padding applied to the input (cheap XLA pad), spatial flattened.
    xp = jnp.pad(x_nchw.astype(jnp.float32),
                 ((0, 0), (0, 0), (1, 1), (1, 1))).reshape(n, c_in, l_in)
    w2 = weight_oihw.reshape(c_out, c_in).astype(jnp.float32)
    b2 = bias.reshape(c_out, 1).astype(jnp.float32)

    # 0/1 selection matrix (built once, passed as a constant VMEM input):
    # flat padded index (2i)*wc + (2j)  ->  output index i*w_out + j.
    q = jnp.arange(l_out)
    src = 2 * (q // w_out) * wc + 2 * (q % w_out)                   # (l_out,)
    sel = (jnp.arange(l_in)[:, None] == src[None, :]).astype(jnp.float32)

    kernel = functools.partial(_fused_conv_relu_pool_kernel, wc=wc)

    out_flat = pl.pallas_call(
        kernel,
        out_shape=jax.ShapeDtypeStruct((n, c_out, l_out), jnp.float32),
        grid=(n,),
        in_specs=[
            pl.BlockSpec((None, c_in, l_in), lambda i: (i, 0, 0)),   # per-batch x
            pl.BlockSpec((c_out, c_in), lambda i: (0, 0)),           # weights
            pl.BlockSpec((c_out, 1), lambda i: (0, 0)),              # bias
            pl.BlockSpec((l_in, l_out), lambda i: (0, 0)),           # sel matrix
        ],
        out_specs=pl.BlockSpec((None, c_out, l_out), lambda i: (i, 0, 0)),
        compiler_params=pltpu.CompilerParams(
            dimension_semantics=("parallel",)),      # shard batch across TCs (v7x)
    )(xp, w2, b2, sel)

    return out_flat.reshape(n, c_out, h_out, w_out)


def reference_forward(x_nchw, weight_oihw, bias):
    """Pure-JAX (XLA) reference mirroring the torch semantics."""
    v1 = jax.lax.conv_general_dilated(
        x_nchw, weight_oihw, window_strides=(1, 1), padding=((1, 1), (1, 1)),
        dimension_numbers=("NCHW", "OIHW", "NCHW"))
    v1 = v1 + bias.reshape(1, -1, 1, 1)
    v3 = jnp.maximum(v1 - 0.5, 0.0)
    v4 = jax.lax.reduce_window(
        v3, -jnp.inf, jax.lax.max,
        window_dimensions=(1, 1, 3, 3), window_strides=(1, 1, 2, 2),
        padding=((0, 0), (0, 0), (1, 1), (1, 1)))
    return v4


if __name__ == "__main__":
    key = jax.random.PRNGKey(0)
    k1, k2, k3 = jax.random.split(key, 3)

    # Small shapes consistent with the module (Cin=3 -> Cout=8).
    N, Cin, H, W, Cout = 2, 3, 16, 16, 8
    x1 = jax.random.normal(k1, (N, Cin, H, W), dtype=jnp.float32)
    weight = jax.random.normal(k2, (Cout, Cin, 1, 1), dtype=jnp.float32) * 0.5
    bias = jax.random.normal(k3, (Cout,), dtype=jnp.float32) * 0.5

    out = jax.block_until_ready(model_forward(x1, weight, bias))
    ref = jax.block_until_ready(reference_forward(x1, weight, bias))

    assert out.shape == (N, Cout, 9, 9), out.shape
    assert out.shape == ref.shape, (out.shape, ref.shape)
    max_err = float(jnp.max(jnp.abs(out - ref)))
    assert jnp.allclose(out, ref, atol=1e-5, rtol=1e-5), max_err

    print("KERNEL_OK")
</pallas_src>

<mosaic_0001>
module attributes {stable_mosaic.version = 11 : i64} {
  func.func @_fused_conv_relu_pool_kernel(%arg0: i32, %arg1: memref<1x3x324xf32, #tpu.memory_space<vmem>>, %arg2: memref<8x3xf32, #tpu.memory_space<vmem>>, %arg3: memref<8x1xf32, #tpu.memory_space<vmem>>, %arg4: memref<324x81xf32, #tpu.memory_space<vmem>>, %arg5: memref<1x8x81xf32, #tpu.memory_space<vmem>>) attributes {dimension_semantics = [#tpu.dimension_semantics<parallel>], iteration_bounds = array<i64: 2>, scalar_prefetch = 0 : i64, scratch_operands = 0 : i64, tpu.core_type = #tpu.core_type<tc>, window_params = [{transform_indices = @transform_0, window_bounds = array<i64: 1, 3, 324>}, {pipeline_mode = #tpu.pipeline_mode<synchronous>, transform_indices = @transform_1, window_bounds = array<i64: 8, 3>}, {pipeline_mode = #tpu.pipeline_mode<synchronous>, transform_indices = @transform_2, window_bounds = array<i64: 8, 1>}, {pipeline_mode = #tpu.pipeline_mode<synchronous>, transform_indices = @transform_3, window_bounds = array<i64: 324, 81>}, {transform_indices = @transform_4, window_bounds = array<i64: 1, 8, 81>}]} {
    %c0 = arith.constant 0 : index
    %c0_0 = arith.constant 0 : index
    %c0_1 = arith.constant 0 : index
    %0 = vector.load %arg1[%c0, %c0_0, %c0_1] : memref<1x3x324xf32, #tpu.memory_space<vmem>>, vector<1x3x324xf32>
    %1 = vector.shape_cast %0 : vector<1x3x324xf32> to vector<3x324xf32>
    %c0_2 = arith.constant 0 : index
    %c0_3 = arith.constant 0 : index
    %2 = vector.load %arg2[%c0_2, %c0_3] : memref<8x3xf32, #tpu.memory_space<vmem>>, vector<8x3xf32>
    %c0_4 = arith.constant 0 : index
    %c0_5 = arith.constant 0 : index
    %3 = vector.load %arg3[%c0_4, %c0_5] : memref<8x1xf32, #tpu.memory_space<vmem>>, vector<8x1xf32>
    %cst = arith.constant 5.000000e-01 : f32
    %4 = vector.broadcast %cst : f32 to vector<8x1xf32>
    %5 = arith.subf %3, %4 : vector<8x1xf32>
    %6 = vector.extract_strided_slice %2 {offsets = [0, 0], sizes = [8, 1], strides = [1, 1]} : vector<8x3xf32> to vector<8x1xf32>
    %7 = vector.extract_strided_slice %1 {offsets = [0, 0], sizes = [1, 324], strides = [1, 1]} : vector<3x324xf32> to vector<1x324xf32>
    %8 = vector.broadcast %6 : vector<8x1xf32> to vector<8x324xf32>
    %9 = vector.broadcast %7 : vector<1x324xf32> to vector<8x324xf32>
    %10 = arith.mulf %8, %9 : vector<8x324xf32>
    %11 = vector.broadcast %5 : vector<8x1xf32> to vector<8x324xf32>
    %12 = arith.addf %11, %10 : vector<8x324xf32>
    %13 = vector.extract_strided_slice %2 {offsets = [0, 1], sizes = [8, 1], strides = [1, 1]} : vector<8x3xf32> to vector<8x1xf32>
    %14 = vector.extract_strided_slice %1 {offsets = [1, 0], sizes = [1, 324], strides = [1, 1]} : vector<3x324xf32> to vector<1x324xf32>
    %15 = vector.broadcast %13 : vector<8x1xf32> to vector<8x324xf32>
    %16 = vector.broadcast %14 : vector<1x324xf32> to vector<8x324xf32>
    %17 = arith.mulf %15, %16 : vector<8x324xf32>
    %18 = arith.addf %12, %17 : vector<8x324xf32>
    %19 = vector.extract_strided_slice %2 {offsets = [0, 2], sizes = [8, 1], strides = [1, 1]} : vector<8x3xf32> to vector<8x1xf32>
    %20 = vector.extract_strided_slice %1 {offsets = [2, 0], sizes = [1, 324], strides = [1, 1]} : vector<3x324xf32> to vector<1x324xf32>
    %21 = vector.broadcast %19 : vector<8x1xf32> to vector<8x324xf32>
    %22 = vector.broadcast %20 : vector<1x324xf32> to vector<8x324xf32>
    %23 = arith.mulf %21, %22 : vector<8x324xf32>
    %24 = arith.addf %18, %23 : vector<8x324xf32>
    %cst_6 = arith.constant 0.000000e+00 : f32
    %25 = vector.broadcast %cst_6 : f32 to vector<8x324xf32>
    %26 = arith.maximumf %24, %25 : vector<8x324xf32>
    %27 = vector.extract_strided_slice %26 {offsets = [0, 306], sizes = [8, 18], strides = [1, 1]} : vector<8x324xf32> to vector<8x18xf32>
    %28 = vector.extract_strided_slice %26 {offsets = [0, 0], sizes = [8, 306], strides = [1, 1]} : vector<8x324xf32> to vector<8x306xf32>
    %29 = tpu.concatenate %27, %28 in 1 : vector<8x18xf32>, vector<8x306xf32> -> vector<8x324xf32>
    %30 = arith.maximumf %29, %26 : vector<8x324xf32>
    %31 = vector.extract_strided_slice %26 {offsets = [0, 18], sizes = [8, 306], strides = [1, 1]} : vector<8x324xf32> to vector<8x306xf32>
    %32 = vector.extract_strided_slice %26 {offsets = [0, 0], sizes = [8, 18], strides = [1, 1]} : vector<8x324xf32> to vector<8x18xf32>
    %33 = tpu.concatenate %31, %32 in 1 : vector<8x306xf32>, vector<8x18xf32> -> vector<8x324xf32>
    %34 = arith.maximumf %30, %33 : vector<8x324xf32>
    %35 = vector.extract_strided_slice %34 {offsets = [0, 323], sizes = [8, 1], strides = [1, 1]} : vector<8x324xf32> to vector<8x1xf32>
    %36 = vector.extract_strided_slice %34 {offsets = [0, 0], sizes = [8, 323], strides = [1, 1]} : vector<8x324xf32> to vector<8x323xf32>
    %37 = tpu.concatenate %35, %36 in 1 : vector<8x1xf32>, vector<8x323xf32> -> vector<8x324xf32>
    %38 = arith.maximumf %37, %34 : vector<8x324xf32>
    %39 = vector.extract_strided_slice %34 {offsets = [0, 1], sizes = [8, 323], strides = [1, 1]} : vector<8x324xf32> to vector<8x323xf32>
    %40 = vector.extract_strided_slice %34 {offsets = [0, 0], sizes = [8, 1], strides = [1, 1]} : vector<8x324xf32> to vector<8x1xf32>
    %41 = tpu.concatenate %39, %40 in 1 : vector<8x323xf32>, vector<8x1xf32> -> vector<8x324xf32>
    %42 = arith.maximumf %38, %41 : vector<8x324xf32>
    %c0_7 = arith.constant 0 : index
    %c0_8 = arith.constant 0 : index
    %43 = vector.load %arg4[%c0_7, %c0_8] : memref<324x81xf32, #tpu.memory_space<vmem>>, vector<324x81xf32>
    %cst_9 = arith.constant dense<0.000000e+00> : vector<8x81xf32>
    %44 = tpu.matmul %42, %43, %cst_9 {dimension_numbers = #tpu.dot_dimension_numbers<[1], [0], [0], [1], [0, 0, 1, 1], [], []>} : vector<8x324xf32>, vector<324x81xf32>, vector<8x81xf32> -> vector<8x81xf32>
    %c0_10 = arith.constant 0 : index
    %c0_11 = arith.constant 0 : index
    %c0_12 = arith.constant 0 : index
    %45 = vector.load %arg5[%c0_10, %c0_11, %c0_12] : memref<1x8x81xf32, #tpu.memory_space<vmem>>, vector<1x8x81xf32>
    %46 = vector.shape_cast %45 : vector<1x8x81xf32> to vector<8x81xf32>
    %47 = vector.shape_cast %44 : vector<8x81xf32> to vector<1x8x81xf32>
    tpu.vector_store %arg5[%c0_10, %c0_11, %c0_12], %47 {strides = array<i32>} : memref<1x8x81xf32, #tpu.memory_space<vmem>>, vector<1x8x81xf32>,
    return
  }
  func.func @transform_0(%arg0: i32) -> (i32, i32, i32) {
    %c0_i32 = arith.constant 0 : i32
    %c0_i32_0 = arith.constant 0 : i32
    %c0_i32_1 = arith.constant 0 : i32
    return %arg0, %c0_i32, %c0_i32_0 : i32, i32, i32
  }
  func.func @transform_1(%arg0: i32) -> (i32, i32) {
    %c0_i32 = arith.constant 0 : i32
    %c0_i32_0 = arith.constant 0 : i32
    %c0_i32_1 = arith.constant 0 : i32
    return %c0_i32, %c0_i32_0 : i32, i32
  }
  func.func @transform_2(%arg0: i32) -> (i32, i32) {
    %c0_i32 = arith.constant 0 : i32
    %c0_i32_0 = arith.constant 0 : i32
    %c0_i32_1 = arith.constant 0 : i32
    return %c0_i32, %c0_i32_0 : i32, i32
  }
  func.func @transform_3(%arg0: i32) -> (i32, i32) {
    %c0_i32 = arith.constant 0 : i32
    %c0_i32_0 = arith.constant 0 : i32
    %c0_i32_1 = arith.constant 0 : i32
    return %c0_i32, %c0_i32_0 : i32, i32
  }
  func.func @transform_4(%arg0: i32) -> (i32, i32, i32) {
    %c0_i32 = arith.constant 0 : i32
    %c0_i32_0 = arith.constant 0 : i32
    %c0_i32_1 = arith.constant 0 : i32
    return %arg0, %c0_i32, %c0_i32_0 : i32, i32, i32
  }
}

</mosaic_0001>

<bundles_post_ra>
// kernel: model_forward.1
= control target key start
LH: loop header
LB: loop body
LE: loop exit
PB: predicated region body
PF: predicated region fallthrough
CT: control target
= control target key end

     0   :  { %s602_s15 = smov 0   ;;  %s769_s0 = inlined_call_operand.vmem [shape: f32[2,3,324], index: 0, kind: input, shape index: {}]   ;;  %s770_s1 = inlined_call_operand.vmem [shape: f32[8,3], index: 1, kind: input, shape index: {}]   ;;  %s771_s2 = inlined_call_operand.vmem [shape: f32[8,1], index: 2, kind: input, shape index: {}]   ;;  %s772_s3 = inlined_call_operand.vmem [shape: f32[324,81], index: 3, kind: input, shape index: {}]   ;;  %s773_s4 = inlined_call_operand.vmem [shape: f32[2,8,81], index: 4, kind: output, shape index: {}]  }
   0x1 LB: > { %s517_s16 = sadd.s32 4294967295, %s564_s15   ;;  %p521_p0 = scmp.ge.s32.totalorder %s564_s15, 1  ;;  %s564_s15 = sphi %s602_s15, %s14_s15  }
   0x2   : > { %p162_p1 = scmp.lt.s32.totalorder %s564_s15, 3 }
   0x4   : > { %p163_p2 = pnand %p521_p0, %p162_p1 }
   0x5   : > { %p187_p3 = scmp.lt.s32.totalorder (!%p163_p2), %s517_s16, 1  ;;  %s569_s25 = smov (!%p163_p2), 78  }
   0x6   : > { %166 = sbr.rel (%p163_p2) target bundleno = 538 (0x21a), region = 36  ;;  %s570_s26 = smov (!%p163_p2), 18  }
   0x7   : > { %s571_s27 = smov (!%p163_p2), 110   ;;  %s572_s28 = smov (!%p163_p2), 50  }
   0x8   : > { %s573_s29 = smov (!%p163_p2), 127   ;;  %s574_s30 = smov (!%p163_p2), 1  }
   0x9   : > { %s575_s5 = smov (!%p163_p2), 61   ;;  %s576_s6 = smov (!%p163_p2), 67  }
   0xb   : > { %v198_v0 = vld [vmem:[%s770_s1] sm:$0xff]  ;;  %v566_v1 = vmov 0   ;;  %v567_v2 = vmov 1   ;;  %v568_v5 = vmov 2   ;;  %s775_s16 = smov (!%p187_p3, %s517_s16), 1  ;;  %vm281_vm0 = vcmask 146432  }
   0xc   : > { %549 = vset.pattern.permute.xlu0 %v566_v1  ;;  %550 = vset.pattern.permute.xlu1 %v567_v2  ;;  %v199_v3 = vld [vmem:[%s771_s2] sm:$0xff]  ;;  %s529_s21 = smul.u32 12, %s775_s16  ;;  %vm306_vm1 = vcmask 408576   ;;  %vm297_vm2 = vcmask 900096   ;;  %vm398_vm3 = vcmask 1043456   ;;  %vm323_vm4 = vcmask 7168  }
   0xd   : > { %203 = vperm.xlu0 %549, %v198_v0   ;;  %229 = vperm.xlu1 %550, %v198_v0   ;;  %v524_v4 = vadd.f32 -0.5, %v199_v3  ;;  %vm348_vm5 = vcmask 547840   ;;  %vm394_vm6 = vcmask 556032   ;;  %vm339_vm7 = vcmask 1039360   ;;  %s523_s19 = sshll.u32 %s775_s16, 3 }
   0xe   : > { %s191_s24 = scalar_lea.vmem %s769_s0, %s529_s21  ;;  %s195_s22 = scalar_lea.vmem %s773_s4, %s523_s19  ;;  %vm462_vm8 = vcmask 662528  }
   0xf   : > { %v196_v6 = vld [vmem:[%s191_s24] sm:$0x77]  ;;  %v197_v7 = vld [vmem:[%s191_s24 + $0x8] sm:$0x7] }
  0x10   : > { %v208_v8 = vperm.slane %v196_v6, 0  ;;  %v210_v9 = vperm.slane %v197_v7, 0  ;;  %v232_v12 = vperm.slane %v196_v6, 1  ;;  %v234_v13 = vperm.slane %v197_v7, 1 }
  0x11   : > { %v209_v14 = vperm.slane %v196_v6, 4  ;;  %v251_v15 = vperm.slane %v196_v6, 2  ;;  %v253_v16 = vperm.slane %v197_v7, 2  ;;  %v233_v22 = vperm.slane %v196_v6, 5 }
  0x12   : > { %v214_v17 = vperm.slane %v208_v8, 0  ;;  %v216_v18 = vperm.slane %v210_v9, 0  ;;  %v238_v19 = vperm.slane %v232_v12, 1  ;;  %v240_v20 = vperm.slane %v234_v13, 1  ;;  %v368_v8 = vld [vmem:[%s772_s3 + $0x78] sm:$0xff]  ;;  %v366_v12 = vld [vmem:[%s772_s3 + $0x68] sm:$0xff] }
  0x13   : > { %v215_v21 = vperm.slane %v209_v14, 0  ;;  %v257_v23 = vperm.slane %v251_v15, 2  ;;  %v259_v24 = vperm.slane %v253_v16, 2  ;;  %v252_v28 = vperm.slane %v196_v6, 6  ;;  %v384_v9 = vld [vmem:[%s772_s3 + $0xf8] sm:$0xff]  ;;  %402 = vmatpush.msra.mxu0 %v368_v8  ;;  %v382_v13 = vld [vmem:[%s772_s3 + $0xe8] sm:$0xff] }
  0x14   : > { %v239_v35 = vperm.slane %v233_v22, 1  ;;  %422 = vmatpush.msra.mxu1 %v384_v9  ;;  %v393_v14 = vld [vmem:[%s772_s3 + $0x140] sm:$0xf]  ;;  %v392_v15 = vld [vmem:[%s772_s3 + $0x138] sm:$0xff]  ;;  %v379_v22 = vld [vmem:[%s772_s3 + $0xd0] sm:$0xff] }
  0x15   : > { %222 = vperm.xlu0 %549, %v524_v4   ;;  %551 = vset.pattern.permute.xlu1 %v568_v5  ;;  %v258_v41 = vperm.slane %v252_v28, 2  ;;  %v365_v16 = vld [vmem:[%s772_s3 + $0x60] sm:$0xff] }
  0x16   : > { %248 = vperm.xlu1 %551, %v198_v0   ;;  %525 = vmatpush.msk.msra.mxu2 %vm398_vm3, %v393_v14  ;;  %v377_v28 = vld [vmem:[%s772_s3 + $0xc0] sm:$0xff] }
  0x18   : > { %450 = vmatpush.msra.mxu2 %v392_v15 }
  0x1d   : > { %557 = vset.pattern.permute.xlu0 %v568_v5 }
  0x7f   : > { %v204_v10 = vpop.permute.xlu0 %203  ;;  %v230_v11 = vpop.permute.xlu1 %229 }
  0x80   : > { %v217_v25 = vmul.f32 %v214_v17, %v204_v10  ;;  %v219_v26 = vmul.f32 %v216_v18, %v204_v10  ;;  %v241_v29 = vmul.f32 %v238_v19, %v230_v11  ;;  %v243_v30 = vmul.f32 %v240_v20, %v230_v11  ;;  %v381_v17 = vld [vmem:[%s772_s3 + $0xe0] sm:$0xff]  ;;  %v391_v18 = vld [vmem:[%s772_s3 + $0x130] sm:$0xff]  ;;  %v364_v19 = vld [vmem:[%s772_s3 + $0x58] sm:$0xff] }
  0x81   : > { %v218_v34 = vmul.f32 %v215_v21, %v204_v10  ;;  %v242_v44 = vmul.f32 %v239_v35, %v230_v11  ;;  %v367_v10 = vld [vmem:[%s772_s3 + $0x70] sm:$0xff]  ;;  %v380_v20 = vld [vmem:[%s772_s3 + $0xd8] sm:$0xff]  ;;  %451 = vmatpush.msra.mxu2 %v391_v18  ;;  %v386_v35 = vld [vmem:[%s772_s3 + $0x108] sm:$0xff] }
  0x82   : > { %v383_v11 = vld [vmem:[%s772_s3 + $0xf0] sm:$0xff]  ;;  %403 = vmatpush.msra.mxu0 %v367_v10 }
  0x83   : > { %423 = vmatpush.msra.mxu1 %v383_v11  ;;  %v363_v21 = vld [vmem:[%s772_s3 + $0x50] sm:$0xff] }
  0x84   : > { %404 = vmatpush.msra.mxu0 %v366_v12 }
  0x85   : > { %424 = vmatpush.msra.mxu1 %v382_v13 }
  0x86   : > { %405 = vmatpush.msra.mxu0 %v365_v16 }
  0x87   : > { %v223_v27 = vpop.permute.xlu0 %222  ;;  %425 = vmatpush.msra.mxu1 %v381_v17 }
  0x88   : > { %v225_v31 = vadd.f32 %v223_v27, %v217_v25  ;;  %v227_v32 = vadd.f32 %v223_v27, %v219_v26  ;;  %v249_v33 = vpop.permute.xlu1 %248  ;;  %v226_v40 = vadd.f32 %v223_v27, %v218_v34  ;;  %406 = vmatpush.msra.mxu0 %v364_v19  ;;  %v378_v25 = vld [vmem:[%s772_s3 + $0xc8] sm:$0xff]  ;;  %v389_v26 = vld [vmem:[%s772_s3 + $0x120] sm:$0xff]  ;;  %v375_v34 = vld [vmem:[%s772_s3 + $0xb0] sm:$0xff] }
  0x89   : > { %v260_v36 = vmul.f32 %v257_v23, %v249_v33  ;;  %v262_v37 = vmul.f32 %v259_v24, %v249_v33  ;;  %v261_v48 = vmul.f32 %v258_v41, %v249_v33  ;;  %426 = vmatpush.msra.mxu1 %v380_v20  ;;  %v390_v23 = vld [vmem:[%s772_s3 + $0x128] sm:$0xff]  ;;  %v361_v27 = vld [vmem:[%s772_s3 + $0x40] sm:$0xff]  ;;  %v359_v33 = vld [vmem:[%s772_s3 + $0x30] sm:$0xff] }
  0x8a   : > { %v244_v38 = vadd.f32 %v241_v29, %v225_v31  ;;  %v246_v39 = vadd.f32 %v243_v30, %v227_v32  ;;  %v245_v47 = vadd.f32 %v242_v44, %v226_v40  ;;  %407 = vmatpush.msra.mxu0 %v363_v21  ;;  %452 = vmatpush.msra.mxu2 %v390_v23  ;;  %v362_v24 = vld [vmem:[%s772_s3 + $0x48] sm:$0xff]  ;;  %v388_v29 = vld [vmem:[%s772_s3 + $0x118] sm:$0xff]  ;;  %v387_v32 = vld [vmem:[%s772_s3 + $0x110] sm:$0xff] }
  0x8b   : > { %427 = vmatpush.msra.mxu1 %v379_v22  ;;  %v360_v30 = vld [vmem:[%s772_s3 + $0x38] sm:$0xff]  ;;  %v373_v40 = vld [vmem:[%s772_s3 + $0xa0] sm:$0xff]  ;;  %v371_v44 = vld [vmem:[%s772_s3 + $0x90] sm:$0xff] }
  0x8c   : > { %v263_v42 = vadd.f32 %v260_v36, %v244_v38  ;;  %v265_v43 = vadd.f32 %v262_v37, %v246_v39  ;;  %v264_v49 = vadd.f32 %v261_v48, %v245_v47  ;;  %408 = vmatpush.msra.mxu0 %v362_v24  ;;  %453 = vmatpush.msra.mxu2 %v389_v26  ;;  %v376_v31 = vld [vmem:[%s772_s3 + $0xb8] sm:$0xff]  ;;  %v358_v36 = vld [vmem:[%s772_s3 + $0x28] sm:$0xff]  ;;  %v385_v38 = vld [vmem:[%s772_s3 + $0x100] sm:$0xff] }
  0x8d   : > { %428 = vmatpush.msra.mxu1 %v378_v25  ;;  %v374_v37 = vld [vmem:[%s772_s3 + $0xa8] sm:$0xff]  ;;  %v357_v39 = vld [vmem:[%s772_s3 + $0x20] sm:$0xff]  ;;  %v356_v41 = vld [vmem:[%s772_s3 + $0x18] sm:$0xff] }
  0x8e   : > { %v266_v45 = vmax.f32 %v263_v42, 0.0  ;;  %v268_v46 = vmax.f32 %v265_v43, 0.0  ;;  %v267_v50 = vmax.f32 %v264_v49, 0.0  ;;  %409 = vmatpush.msra.mxu0 %v361_v27  ;;  %454 = vmatpush.msra.mxu2 %v388_v29  ;;  %v372_v42 = vld [vmem:[%s772_s3 + $0x98] sm:$0xff]  ;;  %v355_v43 = vld [vmem:[%s772_s3 + $0x10] sm:$0xff]  ;;  %v353_v47 = vld [vmem:[%s772_s3] sm:$0xff] }
  0x8f   : > { %429 = vmatpush.msra.mxu1 %v377_v28  ;;  %v369_v48 = vld [vmem:[%s772_s3 + $0x80] sm:$0xff] }
  0x90   : > { %270 = vrot.lane.b32.xlu1 %v268_v46, %s569_s25  ;;  %279 = vrot.lane.b32.xlu0 %v268_v46, %s570_s26 }
  0x91   : > { %275 = vrot.lane.b32.xlu2 %v266_v45, %s570_s26  ;;  %410 = vmatpush.msra.mxu0 %v360_v30 }
  0x92   : > { %430 = vmatpush.msra.mxu1 %v376_v31  ;;  %455 = vmatpush.msra.mxu2 %v387_v32 }
  0x93   : > { %411 = vmatpush.msra.mxu0 %v359_v33 }
  0x94   : > { %431 = vmatpush.msra.mxu1 %v375_v34  ;;  %456 = vmatpush.msra.mxu2 %v386_v35 }
  0x95   : > { %412 = vmatpush.msra.mxu0 %v358_v36 }
  0x96   : > { %432 = vmatpush.msra.mxu1 %v374_v37  ;;  %457 = vmatpush.msra.mxu2 %v385_v38 }
  0x97   : > { %413 = vmatpush.msra.mxu0 %v357_v39 }
  0x98   : > { %295 = vrot.lane.b32.xlu0 %v268_v46, %s571_s27  ;;  %303 = vrot.lane.b32.xlu1 %v266_v45, %s572_s28 }
  0x99   : > { %277 = vrot.lane.b32.xlu2 %v267_v50, %s570_s26  ;;  %433 = vmatpush.msra.mxu1 %v373_v40 }
  0x9a   : > { %414 = vmatpush.msra.mxu0 %v356_v41 }
  0x9b   : > { %434 = vmatpush.msra.mxu1 %v372_v42 }
  0x9c   : > { %415 = vmatpush.msra.mxu0 %v355_v43 }
  0x9d   : > { %435 = vmatpush.msra.mxu1 %v371_v44 }
  0xa1   : > { %293 = vrot.lane.b32.xlu2 %v267_v50, %s571_s27 }
  0xa9   : > { %291 = vrot.lane.b32.xlu2 %v266_v45, %s571_s27 }
  0xeb   : > { %v276_v51 = vpop.permute.xlu2 %275 }
  0xf3   : > { %v278_v52 = vpop.permute.xlu2 %277 }
  0xf4   : > { %v282_v56 = vsel %vm281_vm0, %v276_v51, %v278_v52 }
  0xf5   : > { %v289_v58 = vmax.f32 %v282_v56, %v267_v50 }
  0xfb   : > { %v294_v55 = vpop.permute.xlu2 %293 }
 0x102   : > { %v271_v53 = vpop.permute.xlu1 %270  ;;  %v280_v54 = vpop.permute.xlu0 %279 }
 0x103   : > { %v283_v57 = vsel %vm281_vm0, %v278_v52, %v280_v54  ;;  %v287_v2 = vsel %vm281_vm0, %v271_v53, %v276_v51  ;;  %v292_v4 = vpop.permute.xlu2 %291 }
 0x104   : > { %v290_v59 = vmax.f32 %v283_v57, %v268_v46  ;;  %v288_v3 = vmax.f32 %v287_v2, %v266_v45  ;;  %v298_v5 = vsel %vm297_vm2, %v292_v4, %v294_v55  ;;  %v354_v45 = vld [vmem:[%s772_s3 + $0x8] sm:$0xff] }
 0x105   : > { %v370_v46 = vld [vmem:[%s772_s3 + $0x88] sm:$0xff]  ;;  %416 = vmatpush.msra.mxu0 %v354_v45 }
 0x106   : > { %v629_v6 = vmax.f32 %v288_v3, %v298_v5  ;;  %436 = vmatpush.msra.mxu1 %v370_v46 }
 0x107   : > { %417 = vmatpush.msra.mxu0 %v353_v47 }
 0x108   : > { %437 = vmatpush.msra.mxu1 %v369_v48 }
 0x10a   : > { %v296_v60 = vpop.permute.xlu0 %295  ;;  %v304_v61 = vpop.permute.xlu1 %303 }
 0x10b   : > { %v299_v62 = vsel %vm297_vm2, %v294_v55, %v296_v60  ;;  %v307_v63 = vsel %vm306_vm1, %v296_v60, %v304_v61 }
 0x10c   : > { %v622_v0 = vmax.f32 %v289_v58, %v299_v62  ;;  %v624_v1 = vmax.f32 %v290_v59, %v307_v63 }
 0x10e   : > { %337 = vrot.lane.b32.xlu2 %v624_v1, %s573_s29  ;;  %321 = vrot.lane.b32.xlu1 %v624_v1, %s574_s30  ;;  %v552_v7 = vpack.i.bf16 %v622_v0, %v629_v6 }
 0x10f   : > { %319 = vrot.lane.b32.xlu0 %v622_v0, %s574_s30 }
 0x116   : > { %312 = vrot.lane.b32.xlu1 %v624_v1, %s575_s5  ;;  %317 = vrot.lane.b32.xlu2 %v629_v6, %s574_s30 }
 0x117   : > { %345 = vrot.lane.b32.xlu0 %v629_v6, %s576_s6 }
 0x11f   : > { %553 = vrot.lane.b32.xlu0 %v552_v7, %s573_s29 }
 0x168   : > { %v338_v51 = vpop.permute.xlu2 %337 }
 0x170   : > { %v318_v58 = vpop.permute.xlu2 %317 }
 0x180   : > { %v322_v50 = vpop.permute.xlu1 %321 }
 0x181   : > { %v320_v49 = vpop.permute.xlu0 %319 }
 0x182   : > { %v325_v52 = vsel %vm323_vm4, %v320_v49, %v322_v50  ;;  %v324_v59 = vsel %vm323_vm4, %v318_v58, %v320_v49 }
 0x183   : > { %v332_v53 = vmax.f32 %v325_v52, %v624_v1  ;;  %v331_v2 = vmax.f32 %v324_v59, %v622_v0 }
 0x188   : > { %v313_v57 = vpop.permute.xlu1 %312 }
 0x189   : > { %v346_v54 = vpop.permute.xlu0 %345  ;;  %v329_v60 = vsel %vm323_vm4, %v313_v57, %v318_v58 }
 0x18a   : > { %v349_v55 = vsel %vm348_vm5, %v338_v51, %v346_v54  ;;  %v330_v3 = vmax.f32 %v329_v60, %v629_v6 }
 0x18b   : > { %v352_v56 = vmax.f32 %v332_v53, %v349_v55 }
 0x18d   : > { %526 = vmatmul.msk.f32.vlgmr.msra.gmra.mxu2 %vm394_vm6, %v352_v56 }
 0x191   : > { %v554_v61 = vpop.permute.xlu0 %553 }
 0x192   : > { %v556_v62 = vunpack.i.h.bf16 %v554_v61  ;;  %v555_v63 = vunpack.i.l.bf16 %v554_v61 }
 0x194   : > { %v340_v4 = vsel %vm339_vm7, %v555_v63, %v556_v62  ;;  %v341_v1 = vsel %vm339_vm7, %v556_v62, %v338_v51 }
 0x195   : > { %v350_v5 = vmax.f32 %v330_v3, %v340_v4  ;;  %v351_v7 = vmax.f32 %v331_v2, %v341_v1 }
 0x197   : > { %418 = vmatmul.f32.vlgmr.msra.gmra.mxu0 %v350_v5  ;;  %438 = vmatmul.f32.vlgmr.msra.gmra.mxu1 %v351_v7 }
 0x210   : > { %v459_v11 = vpop.f32.mrf.mxu2 }
 0x214   : > { %v419_v8 = vpop.f32.mrf.mxu0  ;;  %v439_v9 = vpop.f32.mrf.mxu1 }
 0x215   : > { %v440_v10 = vadd.f32 %v439_v9, %v419_v8 }
 0x217   : > { %v460_v12 = vadd.f32 %v459_v11, %v440_v10 }
 0x219   : > { %463 = vst.msk [vmem:[%s195_s22] sm:$0xff] %vm462_vm8, %v460_v12 }
 0x21a PF: > { %s14_s15 = sadd.s32 1, %s564_s15  }
 0x21b   : > { %p11_p4 = scmp.ge.s32.totalorder %s14_s15, 4  }
 0x21d   :  { %13 = sbr.rel (!%p11_p4) target bundleno = 1 (0x1), region = 66 }

</bundles_post_ra>
